<compile_context>
chip_gen: v7x
topology: tpu7x:2x2x1
jax: 0.10.0
libtpu: 0.0.40
codegen_flags: <defaults>
</compile_context>

<pallas_src>
import jax
import jax.numpy as jnp
from jax import lax
from jax.experimental import pallas as pl
from jax.experimental.pallas import tpu as pltpu

_EPS = 1e-5  # nn.InstanceNorm1d default eps


def _mlp_kernel(x_ref, w1_ref, b1_ref, w2_ref, b2_ref, alpha_ref, o_ref):
    # x_ref: (TM, D) tile of the flattened batch.
    x = x_ref[...].astype(jnp.float32)

    # fc1: (TM, D) @ (D, Hd) + (1, Hd)
    h = jnp.dot(x, w1_ref[...], preferred_element_type=jnp.float32) + b1_ref[...]

    # InstanceNorm1d on the (B, 1, Hd) view == per-sample normalization over the
    # hidden axis, no affine params, biased variance, eps inside the rsqrt.
    mean = jnp.mean(h, axis=-1, keepdims=True)
    var = jnp.mean(jnp.square(h - mean), axis=-1, keepdims=True)
    h = (h - mean) * lax.rsqrt(var + _EPS)

    # PReLU with one shared parameter, read as an SMEM scalar.
    alpha = alpha_ref[0]
    h = jnp.where(h >= 0.0, h, h * alpha)

    # Dropout(p=0.0) is an identity.
    # TODO(synk): training-mode dropout with p > 0 (pltpu.prng_* masking) omitted.

    # fc2: (TM, Hd) @ (Hd, D) + (1, D) -> lane-dense (TM, 1024) output tile.
    out = jnp.dot(h, w2_ref[...], preferred_element_type=jnp.float32) + b2_ref[...]
    o_ref[...] = out.astype(o_ref.dtype)


def mlp_forward(x_nchw, params, *, tm=None):
    """x_nchw: (B, C, H, W) float32. params: dict (see init_params)."""
    B, C, H, W = x_nchw.shape
    D = C * H * W
    Hd = params["w1"].shape[1]

    # Contiguous reshape only (free, no transpose): (B,C,H,W) -> (B, D).
    x_flat = x_nchw.reshape(B, D)

    # All rows in one step for small B; MXU-friendly 256-row tiles otherwise.
    if tm is None:
        tm = B if B <= 256 else 256
    assert B % tm == 0, "batch must be divisible by the M tile"
    grid_m = B // tm

    # Grid-invariant weight/bias blocks: constant block index -> DMA'd once.
    const = lambda shape: pl.BlockSpec(shape, lambda m: (0, 0))

    out_flat = pl.pallas_call(
        _mlp_kernel,
        out_shape=jax.ShapeDtypeStruct((B, D), x_nchw.dtype),
        grid_spec=pltpu.PrefetchScalarGridSpec(
            num_scalar_prefetch=0,
            grid=(grid_m,),
            in_specs=[
                pl.BlockSpec((tm, D), lambda m: (m, 0)),            # x tile
                const((D, Hd)), const((1, Hd)),                     # fc1 W, b
                const((Hd, D)), const((1, D)),                      # fc2 W, b
                pl.BlockSpec(memory_space=pltpu.MemorySpace.SMEM),  # PReLU alpha
            ],
            out_specs=pl.BlockSpec((tm, D), lambda m: (m, 0)),
        ),
        compiler_params=pltpu.CompilerParams(
            # NOTE: "parallel" does not split the grid across v7x's two
            # TensorCores; with a single step (B=2) that is exactly what we
            # want. CORE_PARALLEL would only pay off at much larger B/layers.
            dimension_semantics=("parallel",)),
    )(
        x_flat,
        params["w1"], params["b1"],
        params["w2"], params["b2"],
        params["alpha"],
    )

    return out_flat.reshape(B, C, H, W)


def init_params(key, input_dim, hidden_dim, output_dim):
    """Deterministic synthetic weights with nn.Linear-like uniform ranges."""
    ks = jax.random.split(key, 4)

    def lin(kw, kb, fan_in, fan_out):
        bound = 1.0 / (fan_in ** 0.5)
        w = jax.random.uniform(kw, (fan_in, fan_out), jnp.float32, -bound, bound)
        b = jax.random.uniform(kb, (1, fan_out), jnp.float32, -bound, bound)
        return w, b

    w1, b1 = lin(ks[0], ks[1], input_dim, hidden_dim)
    w2, b2 = lin(ks[2], ks[3], hidden_dim, output_dim)
    alpha = jnp.full((1,), 0.25, dtype=jnp.float32)  # nn.PReLU default init
    return dict(w1=w1, b1=b1, w2=w2, b2=b2, alpha=alpha)


def _reference(x_nchw, p):
    """Pure-JAX reference mirroring the PyTorch forward."""
    B, C, H, W = x_nchw.shape
    x = x_nchw.reshape(B, -1)
    h = x @ p["w1"] + p["b1"][0]
    mean = h.mean(axis=-1, keepdims=True)
    var = ((h - mean) ** 2).mean(axis=-1, keepdims=True)
    h = (h - mean) / jnp.sqrt(var + _EPS)
    a = p["alpha"][0]
    h = jnp.where(h >= 0.0, h, a * h)
    out = h @ p["w2"] + p["b2"][0]
    return out.reshape(B, C, H, W)


if __name__ == "__main__":
    key = jax.random.PRNGKey(0)
    kx, kp = jax.random.split(key)

    B, C, H, W = 2, 4, 16, 16       # input_dim = output_dim = C*H*W = 1024
    hidden_dim = 32

    x = jax.random.normal(kx, (B, C, H, W), dtype=jnp.float32)
    params = init_params(kp, C * H * W, hidden_dim, C * H * W)

    out = jax.block_until_ready(mlp_forward(x, params))

    ref = _reference(x, params)
    assert out.shape == (B, C, H, W)
    assert jnp.allclose(out, ref, atol=1e-4, rtol=1e-4), "mismatch vs reference"

    print("KERNEL_OK")
</pallas_src>

<mosaic_0001>
module attributes {stable_mosaic.version = 11 : i64} {
  func.func @_mlp_kernel(%arg0: i32, %arg1: memref<2x1024xf32, #tpu.memory_space<vmem>>, %arg2: memref<1024x32xf32, #tpu.memory_space<vmem>>, %arg3: memref<1x32xf32, #tpu.memory_space<vmem>>, %arg4: memref<32x1024xf32, #tpu.memory_space<vmem>>, %arg5: memref<1x1024xf32, #tpu.memory_space<vmem>>, %arg6: memref<1xf32, #tpu.memory_space<smem>>, %arg7: memref<2x1024xf32, #tpu.memory_space<vmem>>) attributes {dimension_semantics = [#tpu.dimension_semantics<parallel>], iteration_bounds = array<i64: 1>, scalar_prefetch = 0 : i64, scratch_operands = 0 : i64, tpu.core_type = #tpu.core_type<tc>, window_params = [{transform_indices = @transform_0, window_bounds = array<i64: 2, 1024>}, {pipeline_mode = #tpu.pipeline_mode<synchronous>, transform_indices = @transform_1, window_bounds = array<i64: 1024, 32>}, {pipeline_mode = #tpu.pipeline_mode<synchronous>, transform_indices = @transform_2, window_bounds = array<i64: 1, 32>}, {pipeline_mode = #tpu.pipeline_mode<synchronous>, transform_indices = @transform_3, window_bounds = array<i64: 32, 1024>}, {pipeline_mode = #tpu.pipeline_mode<synchronous>, transform_indices = @transform_4, window_bounds = array<i64: 1, 1024>}, {transform_indices = @transform_5, window_bounds = array<i64: 1>}, {transform_indices = @transform_6, window_bounds = array<i64: 2, 1024>}]} {
    %c0 = arith.constant 0 : index
    %c0_0 = arith.constant 0 : index
    %0 = vector.load %arg1[%c0, %c0_0] : memref<2x1024xf32, #tpu.memory_space<vmem>>, vector<2x1024xf32>
    %c0_1 = arith.constant 0 : index
    %c0_2 = arith.constant 0 : index
    %1 = vector.load %arg2[%c0_1, %c0_2] : memref<1024x32xf32, #tpu.memory_space<vmem>>, vector<1024x32xf32>
    %cst = arith.constant dense<0.000000e+00> : vector<2x32xf32>
    %2 = tpu.matmul %0, %1, %cst {dimension_numbers = #tpu.dot_dimension_numbers<[1], [0], [0], [1], [0, 0, 1, 1], [], []>} : vector<2x1024xf32>, vector<1024x32xf32>, vector<2x32xf32> -> vector<2x32xf32>
    %c0_3 = arith.constant 0 : index
    %c0_4 = arith.constant 0 : index
    %3 = vector.load %arg3[%c0_3, %c0_4] : memref<1x32xf32, #tpu.memory_space<vmem>>, vector<1x32xf32>
    %4 = vector.broadcast %3 : vector<1x32xf32> to vector<2x32xf32>
    %5 = arith.addf %2, %4 : vector<2x32xf32>
    %cst_5 = arith.constant dense<0.000000e+00> : vector<2xf32>
    %6 = vector.multi_reduction <add>, %5, %cst_5 [1] : vector<2x32xf32> to vector<2xf32>
    %7 = vector.shape_cast %6 : vector<2xf32> to vector<2x1xf32>
    %cst_6 = arith.constant 3.200000e+01 : f32
    %8 = vector.broadcast %cst_6 : f32 to vector<2x1xf32>
    %9 = arith.divf %7, %8 : vector<2x1xf32>
    %10 = vector.broadcast %9 : vector<2x1xf32> to vector<2x32xf32>
    %11 = arith.subf %5, %10 : vector<2x32xf32>
    %12 = arith.mulf %11, %11 : vector<2x32xf32>
    %cst_7 = arith.constant dense<0.000000e+00> : vector<2xf32>
    %13 = vector.multi_reduction <add>, %12, %cst_7 [1] : vector<2x32xf32> to vector<2xf32>
    %14 = vector.shape_cast %13 : vector<2xf32> to vector<2x1xf32>
    %cst_8 = arith.constant 3.200000e+01 : f32
    %15 = vector.broadcast %cst_8 : f32 to vector<2x1xf32>
    %16 = arith.divf %14, %15 : vector<2x1xf32>
    %17 = vector.broadcast %9 : vector<2x1xf32> to vector<2x32xf32>
    %18 = arith.subf %5, %17 : vector<2x32xf32>
    %cst_9 = arith.constant 9.99999974E-6 : f32
    %19 = vector.broadcast %cst_9 : f32 to vector<2x1xf32>
    %20 = arith.addf %16, %19 : vector<2x1xf32>
    %21 = math.rsqrt %20 : vector<2x1xf32>
    %22 = vector.broadcast %21 : vector<2x1xf32> to vector<2x32xf32>
    %23 = arith.mulf %18, %22 : vector<2x32xf32>
    %c0_10 = arith.constant 0 : index
    %24 = memref.load %arg6[%c0_10] : memref<1xf32, #tpu.memory_space<smem>>
    %cst_11 = arith.constant 0.000000e+00 : f32
    %25 = vector.broadcast %cst_11 : f32 to vector<2x32xf32>
    %26 = arith.cmpf oge, %23, %25 : vector<2x32xf32>
    %27 = vector.broadcast %24 : f32 to vector<2x32xf32>
    %28 = arith.mulf %23, %27 : vector<2x32xf32>
    %29 = arith.select %26, %23, %28 : vector<2x32xi1>, vector<2x32xf32>
    %c0_12 = arith.constant 0 : index
    %c0_13 = arith.constant 0 : index
    %30 = vector.load %arg4[%c0_12, %c0_13] : memref<32x1024xf32, #tpu.memory_space<vmem>>, vector<32x1024xf32>
    %cst_14 = arith.constant dense<0.000000e+00> : vector<2x1024xf32>
    %31 = tpu.matmul %29, %30, %cst_14 {dimension_numbers = #tpu.dot_dimension_numbers<[1], [0], [0], [1], [0, 0, 1, 1], [], []>} : vector<2x32xf32>, vector<32x1024xf32>, vector<2x1024xf32> -> vector<2x1024xf32>
    %c0_15 = arith.constant 0 : index
    %c0_16 = arith.constant 0 : index
    %32 = vector.load %arg5[%c0_15, %c0_16] : memref<1x1024xf32, #tpu.memory_space<vmem>>, vector<1x1024xf32>
    %33 = vector.broadcast %32 : vector<1x1024xf32> to vector<2x1024xf32>
    %34 = arith.addf %31, %33 : vector<2x1024xf32>
    %c0_17 = arith.constant 0 : index
    %c0_18 = arith.constant 0 : index
    %35 = vector.load %arg7[%c0_17, %c0_18] : memref<2x1024xf32, #tpu.memory_space<vmem>>, vector<2x1024xf32>
    tpu.vector_store %arg7[%c0_17, %c0_18], %34 {strides = array<i32>} : memref<2x1024xf32, #tpu.memory_space<vmem>>, vector<2x1024xf32>,
    return
  }
  func.func @transform_0(%arg0: i32) -> (i32, i32) {
    %c0_i32 = arith.constant 0 : i32
    %c0_i32_0 = arith.constant 0 : i32
    return %arg0, %c0_i32 : i32, i32
  }
  func.func @transform_1(%arg0: i32) -> (i32, i32) {
    %c0_i32 = arith.constant 0 : i32
    %c0_i32_0 = arith.constant 0 : i32
    %c0_i32_1 = arith.constant 0 : i32
    return %c0_i32, %c0_i32_0 : i32, i32
  }
  func.func @transform_2(%arg0: i32) -> (i32, i32) {
    %c0_i32 = arith.constant 0 : i32
    %c0_i32_0 = arith.constant 0 : i32
    %c0_i32_1 = arith.constant 0 : i32
    return %c0_i32, %c0_i32_0 : i32, i32
  }
  func.func @transform_3(%arg0: i32) -> (i32, i32) {
    %c0_i32 = arith.constant 0 : i32
    %c0_i32_0 = arith.constant 0 : i32
    %c0_i32_1 = arith.constant 0 : i32
    return %c0_i32, %c0_i32_0 : i32, i32
  }
  func.func @transform_4(%arg0: i32) -> (i32, i32) {
    %c0_i32 = arith.constant 0 : i32
    %c0_i32_0 = arith.constant 0 : i32
    %c0_i32_1 = arith.constant 0 : i32
    return %c0_i32, %c0_i32_0 : i32, i32
  }
  func.func @transform_5(%arg0: i32) -> i32 {
    %c0_i32 = arith.constant 0 : i32
    %c0_i32_0 = arith.constant 0 : i32
    return %c0_i32 : i32
  }
  func.func @transform_6(%arg0: i32) -> (i32, i32) {
    %c0_i32 = arith.constant 0 : i32
    %c0_i32_0 = arith.constant 0 : i32
    return %arg0, %c0_i32 : i32, i32
  }
}

</mosaic_0001>

<bundles_post_ra>
// kernel: tpu_custom_call.1
= control target key start
LH: loop header
LB: loop body
LE: loop exit
PB: predicated region body
PF: predicated region fallthrough
CT: control target
= control target key end

     0   :  { %v1264_v47 = vmov 1983009808   ;;  %v168_v49 = vlaneseq  ;;  %s1843_s0 = inlined_call_operand.vmem [shape: f32[2,1024], index: 0, kind: input, shape index: {}]   ;;  %s1844_s1 = inlined_call_operand.vmem [shape: f32[1024,32], index: 1, kind: input, shape index: {}]   ;;  %s1845_s2 = inlined_call_operand.vmem [shape: f32[1,32], index: 2, kind: input, shape index: {}]   ;;  %s1846_s3 = inlined_call_operand.vmem [shape: f32[32,1024], index: 3, kind: input, shape index: {}]   ;;  %s1847_s4 = inlined_call_operand.vmem [shape: f32[1,1024], index: 4, kind: input, shape index: {}]   ;;  %s1848_s5 = inlined_call_operand.<no memory space> [shape: f32[1], index: 5, kind: input, shape index: {}]   ;;  %s1849_s6 = inlined_call_operand.hbm [shape: f32[2,1024], index: 6, kind: output, shape index: {}]  }
   0x1   :  { %v43_v0 = vld [vmem:[%s1844_s1 + $0x80] sm:$0xff]  ;;  %v44_v1 = vld [vmem:[%s1844_s1 + $0x88] sm:$0xff]  ;;  %v45_v11 = vld [vmem:[%s1844_s1 + $0x90] sm:$0xff]  ;;  %v166_v48 = vunpack.c.l.s4 %v1264_v47 }
   0x2   :  { %v27_v2 = vld [vmem:[%s1844_s1] sm:$0xff]  ;;  %v1073_v3 = vpack.c.bf16 %v44_v1, %v43_v0  ;;  %v28_v4 = vld [vmem:[%s1844_s1 + $0x8] sm:$0xff]  ;;  %v46_v13 = vld [vmem:[%s1844_s1 + $0x98] sm:$0xff]  ;;  %v1428_v0 = vshrl.u32 %v168_v49, 7 }
   0x3   :  { %v75_v5 = vld [vmem:[%s1844_s1 + $0x180] sm:$0xff]  ;;  %v76_v6 = vld [vmem:[%s1844_s1 + $0x188] sm:$0xff]  ;;  %v1075_v7 = vpack.c.bf16 %v28_v4, %v27_v2  ;;  %v29_v14 = vld [vmem:[%s1844_s1 + $0x10] sm:$0xff]  ;;  %v1077_v16 = vpack.c.bf16 %v46_v13, %v45_v11  ;;  %v167_v63 = vunpack.c.0.s8 %v166_v48 }
   0x4   :  { %v1105_v8 = vpack.c.bf16 %v76_v6, %v75_v5  ;;  %v59_v9 = vld [vmem:[%s1844_s1 + $0x100] sm:$0xff]  ;;  %v60_v10 = vld [vmem:[%s1844_s1 + $0x108] sm:$0xff]  ;;  %1074 = vmatprep.subr.bf16.mxu0 %v1073_v3  ;;  %v30_v15 = vld [vmem:[%s1844_s1 + $0x18] sm:$0xff] }
   0x5   :  { %v1107_v12 = vpack.c.bf16 %v60_v10, %v59_v9  ;;  %1076 = vmatpush3.bf16.msra.mxu0 %v1075_v7  ;;  %v1079_v17 = vpack.c.bf16 %v30_v15, %v29_v14  ;;  %v77_v18 = vld [vmem:[%s1844_s1 + $0x190] sm:$0xff]  ;;  %v78_v19 = vld [vmem:[%s1844_s1 + $0x198] sm:$0xff]  ;;  %v47_v23 = vld [vmem:[%s1844_s1 + $0xa0] sm:$0xff]  ;;  %v1455_v13 = vsub.s32 %v167_v63, %v1428_v0 }
   0x6   :  { %1106 = vmatprep.subr.bf16.mxu1 %v1105_v8  ;;  %v61_v20 = vld [vmem:[%s1844_s1 + $0x110] sm:$0xff]  ;;  %v1109_v21 = vpack.c.bf16 %v78_v19, %v77_v18  ;;  %v62_v22 = vld [vmem:[%s1844_s1 + $0x118] sm:$0xff]  ;;  %v48_v24 = vld [vmem:[%s1844_s1 + $0xa8] sm:$0xff]  ;;  %1078 = vmatprep.subr.bf16.mxu0 %v1077_v16 }
   0x7   :  { %1108 = vmatpush3.bf16.msra.mxu1 %v1107_v12  ;;  %v1111_v25 = vpack.c.bf16 %v62_v22, %v61_v20  ;;  %v1081_v26 = vpack.c.bf16 %v48_v24, %v47_v23  ;;  %v31_v27 = vld [vmem:[%s1844_s1 + $0x20] sm:$0xff]  ;;  %v32_v28 = vld [vmem:[%s1844_s1 + $0x28] sm:$0xff]  ;;  %v49_v35 = vld [vmem:[%s1844_s1 + $0xb0] sm:$0xff] }
   0x8   :  { %v79_v29 = vld [vmem:[%s1844_s1 + $0x1a0] sm:$0xff]  ;;  %1110 = vmatprep.subr.bf16.mxu1 %v1109_v21  ;;  %v80_v30 = vld [vmem:[%s1844_s1 + $0x1a8] sm:$0xff]  ;;  %v1083_v33 = vpack.c.bf16 %v32_v28, %v31_v27  ;;  %v50_v36 = vld [vmem:[%s1844_s1 + $0xb8] sm:$0xff] }
   0x9   :  { %v63_v31 = vld [vmem:[%s1844_s1 + $0x120] sm:$0xff]  ;;  %v64_v32 = vld [vmem:[%s1844_s1 + $0x128] sm:$0xff]  ;;  %1080 = vmatpush3.bf16.msra.mxu0 %v1079_v17  ;;  %v1113_v34 = vpack.c.bf16 %v80_v30, %v79_v29  ;;  %v33_v37 = vld [vmem:[%s1844_s1 + $0x30] sm:$0xff]  ;;  %v1085_v39 = vpack.c.bf16 %v50_v36, %v49_v35 }
   0xa   :  { %1082 = vmatprep.subr.bf16.mxu0 %v1081_v26  ;;  %v1115_v38 = vpack.c.bf16 %v64_v32, %v63_v31  ;;  %v34_v40 = vld [vmem:[%s1844_s1 + $0x38] sm:$0xff]  ;;  %v81_v41 = vld [vmem:[%s1844_s1 + $0x1b0] sm:$0xff]  ;;  %v51_v46 = vld [vmem:[%s1844_s1 + $0xc0] sm:$0xff] }
   0xb   :  { %1112 = vmatpush3.bf16.msra.mxu1 %v1111_v25  ;;  %v82_v42 = vld [vmem:[%s1844_s1 + $0x1b8] sm:$0xff]  ;;  %v65_v44 = vld [vmem:[%s1844_s1 + $0x130] sm:$0xff]  ;;  %v52_v50 = vld [vmem:[%s1844_s1 + $0xc8] sm:$0xff]  ;;  %v1087_v51 = vpack.c.bf16 %v34_v40, %v33_v37 }
   0xc   :  { %1114 = vmatprep.subr.bf16.mxu1 %v1113_v34  ;;  %v1117_v43 = vpack.c.bf16 %v82_v42, %v81_v41  ;;  %v66_v45 = vld [vmem:[%s1844_s1 + $0x138] sm:$0xff]  ;;  %v83_v52 = vld [vmem:[%s1844_s1 + $0x1c0] sm:$0xff]  ;;  %v84_v53 = vld [vmem:[%s1844_s1 + $0x1c8] sm:$0xff]  ;;  %v1089_v55 = vpack.c.bf16 %v52_v50, %v51_v46 }
   0xd   :  { %1084 = vmatpush3.bf16.msra.mxu0 %v1083_v33  ;;  %v1119_v54 = vpack.c.bf16 %v66_v45, %v65_v44  ;;  %v35_v56 = vld [vmem:[%s1844_s1 + $0x40] sm:$0xff]  ;;  %v36_v57 = vld [vmem:[%s1844_s1 + $0x48] sm:$0xff]  ;;  %v1121_v59 = vpack.c.bf16 %v84_v53, %v83_v52  ;;  %v53_v61 = vld [vmem:[%s1844_s1 + $0xd0] sm:$0xff] }
   0xe   :  { %1086 = vmatprep.subr.bf16.mxu0 %v1085_v39  ;;  %v67_v58 = vld [vmem:[%s1844_s1 + $0x140] sm:$0xff]  ;;  %v68_v60 = vld [vmem:[%s1844_s1 + $0x148] sm:$0xff]  ;;  %v54_v62 = vld [vmem:[%s1844_s1 + $0xd8] sm:$0xff]  ;;  %v1091_v3 = vpack.c.bf16 %v36_v57, %v35_v56 }
   0xf   :  { %1116 = vmatpush3.bf16.msra.mxu1 %v1115_v38  ;;  %v85_v1 = vld [vmem:[%s1844_s1 + $0x1d0] sm:$0xff]  ;;  %v86_v2 = vld [vmem:[%s1844_s1 + $0x1d8] sm:$0xff]  ;;  %v1123_v4 = vpack.c.bf16 %v68_v60, %v67_v58  ;;  %v1093_v5 = vpack.c.bf16 %v54_v62, %v53_v61  ;;  %v55_v11 = vld [vmem:[%s1844_s1 + $0xe0] sm:$0xff] }
  0x10   :  { %1118 = vmatprep.subr.bf16.mxu1 %v1117_v43  ;;  %v37_v6 = vld [vmem:[%s1844_s1 + $0x50] sm:$0xff]  ;;  %v38_v7 = vld [vmem:[%s1844_s1 + $0x58] sm:$0xff]  ;;  %v1125_v9 = vpack.c.bf16 %v86_v2, %v85_v1  ;;  %v56_v12 = vld [vmem:[%s1844_s1 + $0xe8] sm:$0xff] }
  0x11   :  { %1088 = vmatpush3.bf16.msra.mxu0 %v1087_v51  ;;  %v69_v8 = vld [vmem:[%s1844_s1 + $0x150] sm:$0xff]  ;;  %v70_v10 = vld [vmem:[%s1844_s1 + $0x158] sm:$0xff]  ;;  %v87_v14 = vld [vmem:[%s1844_s1 + $0x1e0] sm:$0xff]  ;;  %v1095_v16 = vpack.c.bf16 %v38_v7, %v37_v6  ;;  %v1097_v19 = vpack.c.bf16 %v56_v12, %v55_v11 }
  0x12   :  { %1090 = vmatprep.subr.bf16.mxu0 %v1089_v55  ;;  %v88_v15 = vld [vmem:[%s1844_s1 + $0x1e8] sm:$0xff]  ;;  %v39_v17 = vld [vmem:[%s1844_s1 + $0x60] sm:$0xff]  ;;  %v1127_v18 = vpack.c.bf16 %v70_v10, %v69_v8  ;;  %v57_v25 = vld [vmem:[%s1844_s1 + $0xf0] sm:$0xff] }
  0x13   :  { %1120 = vmatpush3.bf16.msra.mxu1 %v1119_v54  ;;  %v40_v20 = vld [vmem:[%s1844_s1 + $0x68] sm:$0xff]  ;;  %v71_v21 = vld [vmem:[%s1844_s1 + $0x160] sm:$0xff]  ;;  %v1129_v23 = vpack.c.bf16 %v88_v15, %v87_v14  ;;  %v58_v26 = vld [vmem:[%s1844_s1 + $0xf8] sm:$0xff] }
  0x14   :  { %1122 = vmatprep.subr.bf16.mxu1 %v1121_v59  ;;  %v25_v22 = vld [vmem:[%s1843_s0] sm:$0xff]  ;;  %v72_v24 = vld [vmem:[%s1844_s1 + $0x168] sm:$0xff]  ;;  %v89_v29 = vld [vmem:[%s1844_s1 + $0x1f0] sm:$0xff]  ;;  %v1099_v31 = vpack.c.bf16 %v40_v20, %v39_v17  ;;  %v1101_v35 = vpack.c.bf16 %v58_v26, %v57_v25 }
  0x15   :  { %1092 = vmatpush3.bf16.msra.mxu0 %v1091_v3  ;;  %v171_v27 = vrot.slane %v25_v22, %v1455_v13  ;;  %v164_v28 = vcombine.high %v25_v22, %v25_v22  ;;  %v90_v30 = vld [vmem:[%s1844_s1 + $0x1f8] sm:$0xff]  ;;  %v1131_v34 = vpack.c.bf16 %v72_v24, %v71_v21  ;;  %v41_v36 = vld [vmem:[%s1844_s1 + $0x70] sm:$0xff]  ;;  %v107_v41 = vld [vmem:[%s1844_s1 + $0x280] sm:$0xff] }
  0x16   :  { %1094 = vmatprep.subr.bf16.mxu0 %v1093_v5  ;;  %v42_v37 = vld [vmem:[%s1844_s1 + $0x78] sm:$0xff]  ;;  %v73_v38 = vld [vmem:[%s1844_s1 + $0x170] sm:$0xff]  ;;  %v1133_v39 = vpack.c.bf16 %v90_v30, %v89_v29  ;;  %v108_v42 = vld [vmem:[%s1844_s1 + $0x288] sm:$0xff] }
  0x17   :  { %1124 = vmatpush3.bf16.msra.mxu1 %v1123_v4  ;;  %v179_v32 = vcombine.high %v171_v27, %v171_v27  ;;  %v178_v33 = vrot.slane %v164_v28, %v1455_v13  ;;  %v74_v40 = vld [vmem:[%s1844_s1 + $0x178] sm:$0xff]  ;;  %v139_v44 = vld [vmem:[%s1844_s1 + $0x380] sm:$0xff]  ;;  %v140_v45 = vld [vmem:[%s1844_s1 + $0x388] sm:$0xff]  ;;  %v1103_v46 = vpack.c.bf16 %v42_v37, %v41_v36  ;;  %v1137_v48 = vpack.c.bf16 %v108_v42, %v107_v41 }
  0x18   :  { %1126 = vmatprep.subr.bf16.mxu1 %v1125_v9  ;;  %v1135_v47 = vpack.c.bf16 %v74_v40, %v73_v38  ;;  %v91_v49 = vld [vmem:[%s1844_s1 + $0x200] sm:$0xff]  ;;  %v92_v50 = vld [vmem:[%s1844_s1 + $0x208] sm:$0xff]  ;;  %v1169_v52 = vpack.c.bf16 %v140_v45, %v139_v44  ;;  %v109_v54 = vld [vmem:[%s1844_s1 + $0x290] sm:$0xff] }
  0x19   :  { %1096 = vmatpush3.bf16.msra.mxu0 %v1095_v16  ;;  %270 = vmatprep.mubr.f32.mxu0 %v179_v32  ;;  %v180_v43 = vcombine.high %v178_v33, %v178_v33  ;;  %v123_v51 = vld [vmem:[%s1844_s1 + $0x300] sm:$0xff]  ;;  %v124_v53 = vld [vmem:[%s1844_s1 + $0x308] sm:$0xff]  ;;  %v110_v55 = vld [vmem:[%s1844_s1 + $0x298] sm:$0xff]  ;;  %v1139_v58 = vpack.c.bf16 %v92_v50, %v91_v49 }
  0x1a   :  { %1098 = vmatprep.subr.bf16.mxu0 %v1097_v19  ;;  %v141_v56 = vld [vmem:[%s1844_s1 + $0x390] sm:$0xff]  ;;  %v142_v57 = vld [vmem:[%s1844_s1 + $0x398] sm:$0xff]  ;;  %v1171_v59 = vpack.c.bf16 %v124_v53, %v123_v51  ;;  %v1141_v60 = vpack.c.bf16 %v110_v55, %v109_v54  ;;  %v111_v3 = vld [vmem:[%s1844_s1 + $0x2a0] sm:$0xff] }
  0x1b   :  { %1128 = vmatpush3.bf16.msra.mxu1 %v1127_v18  ;;  %340 = vmatprep.mubr.f32.mxu1 %v180_v43  ;;  %v93_v61 = vld [vmem:[%s1844_s1 + $0x210] sm:$0xff]  ;;  %v94_v62 = vld [vmem:[%s1844_s1 + $0x218] sm:$0xff]  ;;  %v1173_v1 = vpack.c.bf16 %v142_v57, %v141_v56  ;;  %v112_v4 = vld [vmem:[%s1844_s1 + $0x2a8] sm:$0xff] }
  0x1c   :  { %1130 = vmatprep.subr.bf16.mxu1 %v1129_v23  ;;  %v125_v63 = vld [vmem:[%s1844_s1 + $0x310] sm:$0xff]  ;;  %v126_v2 = vld [vmem:[%s1844_s1 + $0x318] sm:$0xff]  ;;  %v143_v5 = vld [vmem:[%s1844_s1 + $0x3a0] sm:$0xff]  ;;  %v1143_v7 = vpack.c.bf16 %v94_v62, %v93_v61  ;;  %v1145_v9 = vpack.c.bf16 %v112_v4, %v111_v3 }
  0x1d   :  { %1100 = vmatpush3.bf16.msra.mxu0 %v1099_v31  ;;  %v144_v6 = vld [vmem:[%s1844_s1 + $0x3a8] sm:$0xff]  ;;  %v1175_v8 = vpack.c.bf16 %v126_v2, %v125_v63  ;;  %v95_v10 = vld [vmem:[%s1844_s1 + $0x220] sm:$0xff]  ;;  %v113_v16 = vld [vmem:[%s1844_s1 + $0x2b0] sm:$0xff] }
  0x1e   :  { %1102 = vmatprep.subr.bf16.mxu0 %v1101_v35  ;;  %v96_v11 = vld [vmem:[%s1844_s1 + $0x228] sm:$0xff]  ;;  %v127_v12 = vld [vmem:[%s1844_s1 + $0x320] sm:$0xff]  ;;  %v1177_v14 = vpack.c.bf16 %v144_v6, %v143_v5  ;;  %v114_v17 = vld [vmem:[%s1844_s1 + $0x2b8] sm:$0xff] }
  0x1f   :  { %1132 = vmatpush3.bf16.msra.mxu1 %v1131_v34  ;;  %v128_v15 = vld [vmem:[%s1844_s1 + $0x328] sm:$0xff]  ;;  %v145_v18 = vld [vmem:[%s1844_s1 + $0x3b0] sm:$0xff]  ;;  %v146_v19 = vld [vmem:[%s1844_s1 + $0x3b8] sm:$0xff]  ;;  %v1147_v20 = vpack.c.bf16 %v96_v11, %v95_v10  ;;  %v1149_v23 = vpack.c.bf16 %v114_v17, %v113_v16 }
  0x20   :  { %1134 = vmatprep.subr.bf16.mxu1 %v1133_v39  ;;  %v97_v21 = vld [vmem:[%s1844_s1 + $0x230] sm:$0xff]  ;;  %v1179_v22 = vpack.c.bf16 %v128_v15, %v127_v12  ;;  %v98_v24 = vld [vmem:[%s1844_s1 + $0x238] sm:$0xff]  ;;  %v115_v28 = vld [vmem:[%s1844_s1 + $0x2c0] sm:$0xff] }
  0x21   :  { %1104 = vmatpush3.bf16.msra.mxu0 %v1103_v46  ;;  %v129_v25 = vld [vmem:[%s1844_s1 + $0x330] sm:$0xff]  ;;  %v130_v26 = vld [vmem:[%s1844_s1 + $0x338] sm:$0xff]  ;;  %v116_v29 = vld [vmem:[%s1844_s1 + $0x2c8] sm:$0xff] }
  0x22   :  { %1138 = vmatprep.subr.bf16.mxu0 %v1137_v48  ;;  %v147_v30 = vld [vmem:[%s1844_s1 + $0x3c0] sm:$0xff]  ;;  %v148_v31 = vld [vmem:[%s1844_s1 + $0x3c8] sm:$0xff] }
  0x23   :  { %1136 = vmatpush3.bf16.msra.mxu1 %v1135_v47  ;;  %v26_v32 = vld [vmem:[%s1843_s0 + $0x8] sm:$0xff] }
  0x24   :  { %1170 = vmatprep.subr.bf16.mxu1 %v1169_v52  ;;  %271 = vmatmul.mubr.f32.vlgmr.msra.gmra.mrb[0].mxu0 %v171_v27  ;;  %v1181_v27 = vpack.c.bf16 %v146_v19, %v145_v18 }
  0x25   :  { %1140 = vmatpush3.bf16.msra.mxu0 %v1139_v58 }
  0x26   :  { %341 = vmatmul.mubr.f32.vlgmr.msra.gmra.mrb[0].mxu1 %v178_v33  ;;  %1142 = vmatprep.subr.bf16.mxu0 %v1141_v60 }
  0x27   :  { %1172 = vmatpush3.bf16.msra.mxu1 %v1171_v59 }
  0x28   :  { %1174 = vmatprep.subr.bf16.mxu1 %v1173_v1 }
  0x29   :  { %1144 = vmatpush3.bf16.msra.mxu0 %v1143_v7 }
  0x2a   :  { %1146 = vmatprep.subr.bf16.mxu0 %v1145_v9 }
  0x2b   :  { %1176 = vmatpush3.bf16.msra.mxu1 %v1175_v8 }
  0x2c   :  { %1178 = vmatprep.subr.bf16.mxu1 %v1177_v14 }
  0x2d   :  { %12 = vsyncpa [#allocation4], 0  ;;  %1148 = vmatpush3.bf16.msra.mxu0 %v1147_v20  ;;  %v1151_v33 = vpack.c.bf16 %v98_v24, %v97_v21  ;;  %v1616_v34 = vrot.slane %v26_v32, %v1455_v13  ;;  %v181_v35 = vcombine.high %v26_v32, %v26_v32  ;;  %v1183_v36 = vpack.c.bf16 %v130_v26, %v129_v25  ;;  %v99_v38 = vld [vmem:[%s1844_s1 + $0x240] sm:$0xff]  ;;  %v100_v39 = vld [vmem:[%s1844_s1 + $0x248] sm:$0xff] }
  0x2e   :  { %1150 = vmatprep.subr.bf16.mxu0 %v1149_v23  ;;  %v1153_v37 = vpack.c.bf16 %v116_v29, %v115_v28  ;;  %v131_v40 = vld [vmem:[%s1844_s1 + $0x340] sm:$0xff]  ;;  %v1185_v41 = vpack.c.bf16 %v148_v31, %v147_v30  ;;  %v132_v42 = vld [vmem:[%s1844_s1 + $0x348] sm:$0xff]  ;;  %v117_v43 = vld [vmem:[%s1844_s1 + $0x2d0] sm:$0xff]  ;;  %v1155_v49 = vpack.c.bf16 %v100_v39, %v99_v38  ;;  %vm486_vm0 = vcmask 254976  }
  0x2f   :  { %1180 = vmatpush3.bf16.msra.mxu1 %v1179_v22  ;;  %v118_v44 = vld [vmem:[%s1844_s1 + $0x2d8] sm:$0xff]  ;;  %v196_v45 = vcombine.high %v1616_v34, %v1616_v34  ;;  %v195_v46 = vrot.slane %v181_v35, %v1455_v13  ;;  %v149_v47 = vld [vmem:[%s1844_s1 + $0x3d0] sm:$0xff]  ;;  %v1187_v51 = vpack.c.bf16 %v132_v42, %v131_v40  ;;  %v119_v58 = vld [vmem:[%s1844_s1 + $0x2e0] sm:$0xff]  ;;  %vm580_vm2 = vcmask 261120  }
  0x30   :  { %1182 = vmatprep.subr.bf16.mxu1 %v1181_v27  ;;  %v150_v48 = vld [vmem:[%s1844_s1 + $0x3d8] sm:$0xff]  ;;  %v1157_v52 = vpack.c.bf16 %v118_v44, %v117_v43  ;;  %v101_v53 = vld [vmem:[%s1844_s1 + $0x250] sm:$0xff]  ;;  %v120_v59 = vld [vmem:[%s1844_s1 + $0x2e8] sm:$0xff] }
  0x31   :  { %1152 = vmatpush3.bf16.msra.mxu0 %v1151_v33  ;;  %410 = vmatprep.mubr.f32.mxu0 %v196_v45  ;;  %v197_v50 = vcombine.high %v195_v46, %v195_v46  ;;  %v102_v54 = vld [vmem:[%s1844_s1 + $0x258] sm:$0xff]  ;;  %v133_v55 = vld [vmem:[%s1844_s1 + $0x350] sm:$0xff]  ;;  %v1189_v56 = vpack.c.bf16 %v150_v48, %v149_v47  ;;  %v151_v60 = vld [vmem:[%s1844_s1 + $0x3e0] sm:$0xff]  ;;  %v1161_v1 = vpack.c.bf16 %v120_v59, %v119_v58 }
  0x32   :  { %1154 = vmatprep.subr.bf16.mxu0 %v1153_v37  ;;  %v134_v57 = vld [vmem:[%s1844_s1 + $0x358] sm:$0xff]  ;;  %v152_v61 = vld [vmem:[%s1844_s1 + $0x3e8] sm:$0xff]  ;;  %v1159_v62 = vpack.c.bf16 %v102_v54, %v101_v53  ;;  %v103_v2 = vld [vmem:[%s1844_s1 + $0x260] sm:$0xff] }
  0x33   :  { %1184 = vmatpush3.bf16.msra.mxu1 %v1183_v36  ;;  %480 = vmatprep.mubr.f32.mxu1 %v197_v50  ;;  %v1191_v63 = vpack.c.bf16 %v134_v57, %v133_v55  ;;  %v104_v3 = vld [vmem:[%s1844_s1 + $0x268] sm:$0xff]  ;;  %v135_v4 = vld [vmem:[%s1844_s1 + $0x360] sm:$0xff]  ;;  %v1193_v5 = vpack.c.bf16 %v152_v61, %v151_v60  ;;  %v121_v7 = vld [vmem:[%s1844_s1 + $0x2f0] sm:$0xff] }
  0x34   :  { %1186 = vmatprep.subr.bf16.mxu1 %v1185_v41  ;;  %v136_v6 = vld [vmem:[%s1844_s1 + $0x368] sm:$0xff]  ;;  %v122_v8 = vld [vmem:[%s1844_s1 + $0x2f8] sm:$0xff]  ;;  %v153_v9 = vld [vmem:[%s1844_s1 + $0x3f0] sm:$0xff]  ;;  %v1163_v11 = vpack.c.bf16 %v104_v3, %v103_v2 }
  0x35   :  { %1156 = vmatpush3.bf16.msra.mxu0 %v1155_v49  ;;  %v154_v10 = vld [vmem:[%s1844_s1 + $0x3f8] sm:$0xff]  ;;  %v1195_v12 = vpack.c.bf16 %v136_v6, %v135_v4  ;;  %v1165_v14 = vpack.c.bf16 %v122_v8, %v121_v7  ;;  %v105_v15 = vld [vmem:[%s1844_s1 + $0x270] sm:$0xff]  ;;  %v928_v23 = vld [vmem:[%s1845_s2] ss:$0 sm:$0xff] }
  0x36   :  { %1158 = vmatprep.subr.bf16.mxu0 %v1157_v52  ;;  %v106_v16 = vld [vmem:[%s1844_s1 + $0x278] sm:$0xff]  ;;  %v1197_v17 = vpack.c.bf16 %v154_v10, %v153_v9  ;;  %v137_v18 = vld [vmem:[%s1844_s1 + $0x370] sm:$0xff]  ;;  %v507_v45 = vld [vmem:[%s1846_s3 + $0x8] sm:$0xff]  ;;  %v1265_v52 = vmov 0.0  }
  0x37   :  { %1188 = vmatpush3.bf16.msra.mxu1 %v1187_v51  ;;  %v138_v19 = vld [vmem:[%s1844_s1 + $0x378] sm:$0xff]  ;;  %v1167_v20 = vpack.c.bf16 %v106_v16, %v105_v15  ;;  %v506_v50 = vld [vmem:[%s1846_s3] sm:$0xff]  ;;  %v508_v55 = vld [vmem:[%s1846_s3 + $0x10] sm:$0xff] }
  0x38   :  { %1190 = vmatprep.subr.bf16.mxu1 %v1189_v56  ;;  %v1199_v21 = vpack.c.bf16 %v138_v19, %v137_v18  ;;  %v509_v47 = vld [vmem:[%s1846_s3 + $0x18] sm:$0xff]  ;;  %v514_v51 = vld [vmem:[%s1846_s3 + $0x40] sm:$0xff]  ;;  %v516_v56 = vld [vmem:[%s1846_s3 + $0x50] sm:$0xff] }
  0x39   :  { %1160 = vmatpush3.bf16.msra.mxu0 %v1159_v62  ;;  %v517_v49 = vld [vmem:[%s1846_s3 + $0x58] sm:$0xff]  ;;  %v1203_v54 = vpack.c.bf16 %v514_v51, %v506_v50  ;;  %v523_v57 = vld [vmem:[%s1846_s3 + $0x88] sm:$0xff]  ;;  %v1211_v58 = vpack.c.bf16 %v516_v56, %v508_v55  ;;  %v530_v2 = vld [vmem:[%s1846_s3 + $0xc0] sm:$0xff]  ;;  %v558_v55 = vsub.s32 4, %v1428_v0  ;;  %v566_v56 = vsub.s32 6, %v1428_v0 }
  0x3a   :  { %1162 = vmatprep.subr.bf16.mxu0 %v1161_v1  ;;  %v1209_v53 = vpack.c.bf16 %v517_v49, %v509_v47  ;;  %v531_v59 = vld [vmem:[%s1846_s3 + $0xc8] sm:$0xff]  ;;  %v525_v60 = vld [vmem:[%s1846_s3 + $0x98] sm:$0xff]  ;;  %v522_v1 = vld [vmem:[%s1846_s3 + $0x80] sm:$0xff] }
  0x3b   :  { %1192 = vmatpush3.bf16.msra.mxu1 %v1191_v63  ;;  %v533_v61 = vld [vmem:[%s1846_s3 + $0xd8] sm:$0xff]  ;;  %v1205_v62 = vpack.c.bf16 %v531_v59, %v523_v57  ;;  %v524_v3 = vld [vmem:[%s1846_s3 + $0x90] sm:$0xff]  ;;  %v1207_v4 = vpack.c.bf16 %v530_v2, %v522_v1  ;;  %v511_v6 = vld [vmem:[%s1846_s3 + $0x28] sm:$0xff]  ;;  %v562_v59 = vsub.s32 5, %v1428_v0 }
  0x3c   :  { %1194 = vmatprep.subr.bf16.mxu1 %v1193_v5  ;;  %v1213_v63 = vpack.c.bf16 %v533_v61, %v525_v60  ;;  %v532_v5 = vld [vmem:[%s1846_s3 + $0xd0] sm:$0xff]  ;;  %v519_v7 = vld [vmem:[%s1846_s3 + $0x68] sm:$0xff]  ;;  %v513_v10 = vld [vmem:[%s1846_s3 + $0x38] sm:$0xff]  ;;  %v570_v60 = vsub.s32 7, %v1428_v0 }
  0x3d   :  { %1164 = vmatpush3.bf16.msra.mxu0 %v1163_v11  ;;  %v1215_v8 = vpack.c.bf16 %v532_v5, %v524_v3  ;;  %v1217_v9 = vpack.c.bf16 %v519_v7, %v511_v6  ;;  %v521_v11 = vld [vmem:[%s1846_s3 + $0x78] sm:$0xff]  ;;  %v518_v18 = vld [vmem:[%s1846_s3 + $0x60] sm:$0xff] }
  0x3e   :  { %1166 = vmatprep.subr.bf16.mxu0 %v1165_v14 }
  0x3f   :  { %1196 = vmatpush3.bf16.msra.mxu1 %v1195_v12  ;;  %v1225_v12 = vpack.c.bf16 %v521_v11, %v513_v10 }
  0x40   :  { %1198 = vmatprep.subr.bf16.mxu1 %v1197_v17  ;;  %v510_v17 = vld [vmem:[%s1846_s3 + $0x20] sm:$0xff] }
  0x41   :  { %1168 = vmatpush3.bf16.msra.mxu0 %v1167_v20  ;;  %v503_v20 = vstv %s1848_s5 }
  0x43   :  { %1200 = vmatpush3.bf16.msra.mxu1 %v1199_v21  ;;  %v512_v21 = vld [vmem:[%s1846_s3 + $0x30] sm:$0xff] }
  0x44   :  { %411 = vmatmul.mubr.f32.vlgmr.msra.gmra.mrb[2].mxu0 %v1616_v34  ;;  %1210 = vmatprep.subr.bf16.mxu1 %v1209_v53 }
  0x45   :  { %648 = vmatprep.mubr.f32.mxu0 %v1265_v52 }
  0x46   :  { %481 = vmatmul.mubr.f32.vlgmr.msra.gmra.mrb[2].mxu1 %v195_v46  ;;  %v515_v46 = vld [vmem:[%s1846_s3 + $0x48] sm:$0xff] }
  0x47   :  { %v1201_v48 = vpack.c.bf16 %v515_v46, %v507_v45  ;;  %719 = vmatprep.mubr.f32.mxu1 %v1265_v52  ;;  %1212 = vmatpush1.bf16.msra.mxu1 %v1211_v58 }
  0x48   :  { %1214 = vmatprep.subr.bf16.mxu1 %v1213_v63 }
  0x49   :  { %1202 = vmatprep.subr.bf16.mxu0 %v1201_v48 }
  0x4a   :  { %1204 = vmatpush1.bf16.msra.mxu0 %v1203_v54 }
  0x4b   :  { %1206 = vmatprep.subr.bf16.mxu0 %v1205_v62  ;;  %1216 = vmatpush1.bf16.msra.mxu1 %v1215_v8 }
  0x4c   :  { %1226 = vmatprep.subr.bf16.mxu1 %v1225_v12 }
  0x4e   :  { %1208 = vmatpush1.bf16.msra.mxu0 %v1207_v4 }
  0x4f   :  { %1218 = vmatprep.subr.bf16.mxu0 %v1217_v9 }
  0xf7   :  { %v965_v22 = vpop.f32.mrb[0].mxu0 }
  0xf8   :  { %v966_v24 = vpop.f32.mrb[1].mxu0 }
  0xf9   :  { %v1000_v25 = vpop.f32.mrb[0].mxu1  ;;  %v967_v26 = vadd.f32 %v966_v24, %v965_v22  ;;  %v520_v22 = vld [vmem:[%s1846_s3 + $0x70] sm:$0xff] }
  0xfa   :  { %v1001_v27 = vpop.f32.mrb[1].mxu1 }
  0xfb   :  { %v1002_v28 = vadd.f32 %v1001_v27, %v1000_v25  ;;  %v273_v29 = vadd.f32 %v967_v26, %v928_v23  ;;  %v527_v23 = vld [vmem:[%s1846_s3 + $0xa8] sm:$0xff]  ;;  %v529_v26 = vld [vmem:[%s1846_s3 + $0xb8] sm:$0xff] }
  0xfc   :  { %v535_v25 = vld [vmem:[%s1846_s3 + $0xe8] sm:$0xff]  ;;  %v537_v27 = vld [vmem:[%s1846_s3 + $0xf8] sm:$0xff] }
  0xfd   :  { %v343_v30 = vadd.f32 %v1002_v28, %v273_v29  ;;  %v1219_v28 = vpack.c.bf16 %v518_v18, %v510_v17 }
 0x117   :  { %v1035_v31 = vpop.f32.mrb[2].mxu0 }
 0x118   :  { %v1036_v32 = vpop.f32.mrb[3].mxu0 }
 0x119   :  { %v1070_v33 = vpop.f32.mrb[2].mxu1  ;;  %v1037_v35 = vadd.f32 %v1036_v32, %v1035_v31  ;;  %v526_v31 = vld [vmem:[%s1846_s3 + $0xa0] sm:$0xff]  ;;  %v1221_v32 = vpack.c.bf16 %v535_v25, %v527_v23 }
 0x11a   :  { %v1071_v36 = vpop.f32.mrb[3].mxu1 }
 0x11b   :  { %v1072_v37 = vadd.f32 %v1071_v36, %v1070_v33  ;;  %v413_v34 = vadd.f32 %v1037_v35, %v343_v30  ;;  %v1227_v30 = vpack.c.bf16 %v520_v22, %v512_v21  ;;  %v1229_v33 = vpack.c.bf16 %v537_v27, %v529_v26  ;;  %v534_v35 = vld [vmem:[%s1846_s3 + $0xe0] sm:$0xff]  ;;  %v528_v36 = vld [vmem:[%s1846_s3 + $0xb0] sm:$0xff] }
 0x11d   :  { %v483_v38 = vadd.f32 %v1072_v37, %v413_v34  ;;  %v536_v37 = vld [vmem:[%s1846_s3 + $0xf0] sm:$0xff] }
 0x11f   :  { %v487_v39 = vsel %vm486_vm0, %v483_v38, 0.0 }
 0x120   :  { %488 = vadd.xlane.f32.xlu0 %v487_v39  ;;  %v1231_v39 = vpack.c.bf16 %v536_v37, %v528_v36 }
 0x1ad   :  { %v489_v40 = vpop.xlane.xlu0 %488 }
 0x1ae   :  { %v491_v41 = vmul.f32 0.03125, %v489_v40  ;;  %v542_v40 = vsub.s32 0, %v1428_v0 }
 0x1b0   :  { %v492_v42 = vsub.f32 %v483_v38, %v491_v41  ;;  %v1223_v38 = vpack.c.bf16 %v534_v35, %v526_v31  ;;  %v550_v41 = vsub.s32 2, %v1428_v0 }
 0x1b2   :  { %v493_v43 = vmul.f32 %v492_v42, %v492_v42 }
 0x1b4   :  { %v494_v44 = vsel %vm486_vm0, %v493_v43, 0.0  ;;  %v546_v43 = vsub.s32 1, %v1428_v0 }
 0x1b5   :  { %495 = vadd.xlane.f32.xlu0 %v494_v44  ;;  %v554_v44 = vsub.s32 3, %v1428_v0 }
 0x242   :  { %v496_v14 = vpop.xlane.xlu0 %495 }
 0x243   :  { %v497_v15 = vmul.f32 0.03125, %v496_v14 }
 0x245   :  { %v498_v16 = vadd.f32 1e-05, %v497_v15 }
 0x247   :  { %1238 = vrsqrt.f32 %v498_v16 }
 0x251   :  { %v1239_v19 = vpop.eup %1238 }
 0x252   :  { %v500_v24 = vmul.f32 %v1239_v19, %v492_v42  ;;  %v538_v42 = vld [vmem:[%s1847_s4] sm:$0xff]  ;;  %s1266_s4 = smov [#allocation3]  }
 0x253   :  { %v543_v45 = vrot.slane %v538_v42, %v542_v40  ;;  %v551_v46 = vrot.slane %v538_v42, %v550_v41  ;;  %v547_v47 = vrot.slane %v538_v42, %v546_v43  ;;  %v555_v48 = vrot.slane %v538_v42, %v554_v44  ;;  %s920_s26 = sshll.u32 %s1266_s4, 4  ;;  %s921_s26 = int_to_ptr.vmem [resolvable:$true] %s920_s26 }
 0x254   :  { %vm502_vm1 = vcmp.ge.f32.partialorder %v500_v24, 0.0  ;;  %v504_v29 = vmul.f32 %v503_v20, %v500_v24  ;;  %v559_v63 = vrot.slane %v538_v42, %v558_v55  ;;  %v567_v1 = vrot.slane %v538_v42, %v566_v56  ;;  %s1240_s27 = scalar_lea.vmem %s921_s26, 256  ;;  %p1245_p1 = scmp.lt.s32.totalorder %s921_s26, %s921_s26 }
 0x255   :  { %v563_v4 = vrot.slane %v538_v42, %v562_v59  ;;  %v571_v5 = vrot.slane %v538_v42, %v570_v60  ;;  %p1241_p0 = scmp.ne.s32.totalorder %s921_s26, %s1240_s27  ;;  %p1246_p2 = scmp.lt.s32.totalorder %s1240_s27, %s1240_s27 }
 0x256   :  { %v505_v34 = vsel %vm502_vm1, %v500_v24, %v504_v29 }
 0x257   :  { %929 = vmatmul.mubr.msk.f32.vlgmr.msra.gmra.mrb[4].mxu0 %vm580_vm2, %v505_v34  ;;  %930 = vmatmul.mubr.msk.f32.vlgmr.msra.gmra.mrb[4].mxu1 %vm580_vm2, %v505_v34  ;;  %p1247_p3 = por %p1246_p2, %p1245_p1 }
 0x258   :  { %1220 = vmatpush1.bf16.msra.mxu0 %v1219_v28  ;;  %1228 = vmatpush1.bf16.msra.mxu1 %v1227_v30 }
 0x259   :  { %1222 = vmatprep.subr.bf16.mxu0 %v1221_v32  ;;  %1230 = vmatprep.subr.bf16.mxu1 %v1229_v33  ;;  %p1248_p4 = pnand %p1247_p3, %p1241_p0 }
 0x25a   :  { %790 = vmatprep.mubr.f32.mxu0 %v1265_v52  ;;  %861 = vmatprep.mubr.f32.mxu1 %v1265_v52 }
 0x25c   :  { %1224 = vmatpush1.bf16.msra.mxu0 %v1223_v38  ;;  %1232 = vmatpush1.bf16.msra.mxu1 %v1231_v39 }
 0x25f   :  { %931 = vmatmul.mubr.msk.f32.vlgmr.msra.gmra.mrb[6].mxu0 %vm580_vm2, %v505_v34  ;;  %932 = vmatmul.mubr.msk.f32.vlgmr.msra.gmra.mrb[6].mxu1 %vm580_vm2, %v505_v34 }
 0x32a   :  { %v650_v49 = vpop.f32.mrb[4].mxu0  ;;  %v721_v50 = vpop.f32.mrb[4].mxu1 }
 0x32b   :  { %v651_v51 = vadd.f32 %v650_v49, %v543_v45  ;;  %v722_v52 = vadd.f32 %v721_v50, %v551_v46  ;;  %v652_v53 = vpop.f32.mrb[5].mxu0  ;;  %v723_v54 = vpop.f32.mrb[5].mxu1 }
 0x32c   :  { %v653_v57 = vadd.f32 %v652_v53, %v547_v47  ;;  %v724_v58 = vadd.f32 %v723_v54, %v555_v48 }
 0x32e   :  { %v876_v61 = vcombine.low %v651_v51, %v653_v57  ;;  %v877_v62 = vcombine.low %v722_v52, %v724_v58 }
 0x330   :  { %v884_v2 = vrot.slane %v876_v61, %v1455_v13  ;;  %v891_v3 = vrot.slane %v877_v62, %v1455_v13 }
 0x332   :  { %v792_v6 = vpop.f32.mrb[6].mxu0  ;;  %v863_v7 = vpop.f32.mrb[6].mxu1  ;;  %v892_v8 = vcombine.low %v884_v2, %v891_v3 }
 0x333   :  { %v793_v9 = vadd.f32 %v792_v6, %v559_v63  ;;  %v864_v10 = vadd.f32 %v863_v7, %v567_v1  ;;  %v794_v11 = vpop.f32.mrb[7].mxu0  ;;  %v865_v12 = vpop.f32.mrb[7].mxu1 }
 0x334   :  { %v795_v14 = vadd.f32 %v794_v11, %v563_v4  ;;  %v866_v15 = vadd.f32 %v865_v12, %v571_v5  ;;  %912 = vst [vmem:[#allocation3] sm:$0xff] %v892_v8 }
 0x336   :  { %v893_v0 = vcombine.low %v793_v9, %v795_v14  ;;  %v894_v16 = vcombine.low %v864_v10, %v866_v15 }
 0x338   :  { %v901_v17 = vrot.slane %v893_v0, %v1455_v13  ;;  %v908_v18 = vrot.slane %v894_v16, %v1455_v13 }
 0x33a   :  { %v909_v19 = vcombine.low %v901_v17, %v908_v18 }
 0x33c   :  { %913 = vst [vmem:[#allocation3 + $0x8] sm:$0xff] %v909_v19 }
 0x33d   :  { %1251 = shalt.err (!%p1248_p4)
}
 0x33e   :  { %s1252_s30 = scalar_lea.hbm %s1849_s6, 256 }
 0x33f   :  { %p1253_p5 = scmp.ne.s32.totalorder %s1849_s6, %s1252_s30  ;;  %p1256_p6 = scmp.lt.u32.totalorder %s1252_s30, %s1849_s6 }
 0x341   :  { %p1258_p7 = pnand %p1256_p6, %p1253_p5 }
 0x343   :  { %1261 = shalt.err (!%p1258_p7)
}
 0x344   :  { %923 = dma.vmem_to_hbm [thread:$0]  %s921_s26, 256, %s1849_s6, [#allocation4]  }
 0x345   :  { %1262 = dma.done.wait [#allocation4], 256  }
 0x346   :  { %1263 = vsyncadd [#allocation4], 4294967040 }
 0x347   :  { %927 = vsyncpa [#allocation4], 1 }

</bundles_post_ra>
